<compile_context>
chip_gen: v7x
topology: tpu7x:2x2x1
jax: 0.10.0
libtpu: 0.0.40
codegen_flags: <defaults>
</compile_context>

<pallas_src>
import functools

import jax
import jax.numpy as jnp
from jax import lax
from jax.experimental import pallas as pl
from jax.experimental.pallas import tpu as pltpu


def _head_kernel(x_ref, wqkv_ref, o_ref, *, head_size):
    """One grid step: (Bt, T, C) bf16 activations vs the fused (C, 3H) bf16 weight."""
    Bt, T, C = x_ref.shape
    H = head_size

    # --- Fused QKV projection as one 2-D MXU matmul with a real M dimension. ---
    x2 = x_ref[...].reshape(Bt * T, C)                            # (Bt*T, C) bf16
    w = wqkv_ref[...]                                             # (C, 3H) bf16 = [wq*scale | wk | wv]
    qkv = jnp.dot(x2, w, preferred_element_type=jnp.float32)      # (Bt*T, 3H) f32
    qkv = qkv.reshape(Bt, T, 3 * H)

    # Scale (head_size**-0.5) already folded into the q weights host-side.
    # Lane-offset slices at 0/H/2H are negligible XLU work at H=16 (one 128-lane vreg).
    q = qkv[:, :, 0 * H:1 * H].astype(jnp.bfloat16)
    k = qkv[:, :, 1 * H:2 * H].astype(jnp.bfloat16)
    v = qkv[:, :, 2 * H:3 * H].astype(jnp.bfloat16)

    # Attention scores: contract the head dim directly (no k transpose), batched over Bt.
    s = lax.dot_general(q, k, (((2,), (2,)), ((0,), (0,))),
                        preferred_element_type=jnp.float32)       # (Bt, T, T) f32

    # Causal mask: the diagonal is always unmasked => no all-masked row => no NaN
    # from -inf. (If reused with padding masks, switch to a large finite negative.)
    causal = (lax.broadcasted_iota(jnp.int32, (T, T), 1)
              <= lax.broadcasted_iota(jnp.int32, (T, T), 0))
    s = jnp.where(causal[None, :, :], s, -jnp.inf)

    # Numerically stable fp32 softmax; approx reciprocal runs on the EUP slot.
    m = jnp.max(s, axis=-1, keepdims=True)
    e = jnp.exp(s - m)
    denom = jnp.sum(e, axis=-1, keepdims=True)                    # >= 1 (diag unmasked)
    p = e * pl.reciprocal(denom, approx=True)

    # TODO(synk): attention dropout on `p` is identity here (eval mode); training-mode
    # dropout would use pltpu.prng_seed + pltpu.stateful_bernoulli.

    out = lax.dot_general(p.astype(jnp.bfloat16), v, (((2,), (1,)), ((0,), (0,))),
                          preferred_element_type=jnp.float32)     # (Bt, T, H) f32

    # Lane-dense store: flatten (Bt, T, H) -> (Bt, T*H) (= 128 lanes at these shapes)
    # so the store is a full-width vst rather than T masked 16-lane vst.msk stores.
    out_flat = jnp.concatenate([out[:, t, :] for t in range(T)], axis=-1)
    o_ref[...] = out_flat.astype(o_ref.dtype)


def _choose_block_b(B, T, C, H):
    """Largest legal divisor of B under a per-step VMEM cap; split only for real work."""
    lanes = 128
    # Conservative per-batch-element VMEM bytes per grid step: double-buffered in/out
    # blocks + lane-padded fp32 intermediates (qkv, scores, probs).
    per_elem = (
        2 * T * C * 2                       # x block, bf16, double-buffered
        + T * max(3 * H, lanes) * 4         # qkv fp32 (lane-padded)
        + 2 * T * max(T, lanes) * 4         # scores + probs fp32 (lane-padded)
        + 2 * T * H * 4                     # output block fp32, double-buffered
    )
    per_step_cap = 16 * 1024 * 1024         # <= ~16 MiB/step: safe inside v7x's 64 MiB VMEM
    max_bb = max(1, per_step_cap // per_elem)

    # Legal block_b for the lane-dense (block_b, T*H) out block: must equal the full
    # batch dim or be a multiple of 8 (sublane constraint on 2-D block shapes).
    legal = [d for d in range(1, B + 1)
             if B % d == 0 and (d == B or d % 8 == 0) and d <= max_bb]
    bb = max(legal) if legal else B         # per_elem is ~20 KiB, so B always fits in practice

    # Split into >=2 grid steps (so both v7x TensorCores get work / pipelining kicks in)
    # only when each step still carries plenty of rows; otherwise one step minimizes
    # the fixed per-step overhead (the grid is a serial loop on v5e/v6e).
    if bb == B and B % 2 == 0:
        half = B // 2
        if half % 8 == 0 and half * T >= 256 and half <= max_bb:
            bb = half
    return bb, per_elem


def head_forward(x, wk, wq, wv, *, block_b=None):
    """x: (B, T, C); wk/wq/wv: (C, H) (PyTorch Linear weight, transposed).

    Returns (B, T, H) float32, matching the eval-mode PyTorch Head.forward.
    """
    B, T, C = x.shape
    H = wk.shape[1]
    scale = jnp.float32(H) ** jnp.float32(-0.5)

    # Fuse the three projections into one weight; fold the softmax scale into wq.
    w_qkv = jnp.concatenate(
        [wq.astype(jnp.float32) * scale,
         wk.astype(jnp.float32),
         wv.astype(jnp.float32)],
        axis=1,
    ).astype(jnp.bfloat16)                                        # (C, 3H) bf16
    x_bf16 = x.astype(jnp.bfloat16)

    auto_bb, per_elem = _choose_block_b(B, T, C, H)
    if block_b is None:
        block_b = auto_bb
    assert B % block_b == 0 and (block_b == B or block_b % 8 == 0), (B, block_b)
    grid = (B // block_b,)

    # VMEM limit derived from the actual per-step footprint (weight double-buffered too).
    per_step_bytes = block_b * per_elem + 2 * (C * 3 * H) * 2
    vmem_limit = int(min(48 * 1024 * 1024, max(32 * 1024 * 1024, 2 * per_step_bytes)))

    flops = 2 * B * T * (3 * C * H + 2 * T * H)                   # QKV proj + q@k^T + p@v
    transcendentals = B * T * (T + 1)                             # exp + reciprocal
    bytes_accessed = x_bf16.size * 2 + w_qkv.size * 2 + B * T * H * 4
    cost = pl.CostEstimate(
        flops=flops, transcendentals=transcendentals, bytes_accessed=bytes_accessed
    )

    kernel = functools.partial(_head_kernel, head_size=H)
    out_flat = pl.pallas_call(
        kernel,
        out_shape=jax.ShapeDtypeStruct((B, T * H), jnp.float32),
        grid_spec=pltpu.PrefetchScalarGridSpec(
            num_scalar_prefetch=0,
            grid=grid,
            in_specs=[
                pl.BlockSpec((block_b, T, C), lambda b: (b, 0, 0)),
                pl.BlockSpec((C, 3 * H), lambda b: (0, 0)),
            ],
            out_specs=pl.BlockSpec((block_b, T * H), lambda b: (b, 0)),
        ),
        compiler_params=pltpu.CompilerParams(
            dimension_semantics=("parallel",),
            vmem_limit_bytes=vmem_limit,
        ),
        cost_estimate=cost,
    )(x_bf16, w_qkv)

    # Free: (B, T*H) and (B, T, H) share the same row-major layout.
    return out_flat.reshape(B, T, H)


def head_reference(x, wk, wq, wv):
    """Pure-JAX fp32 reference mirroring the PyTorch forward (eval mode)."""
    k = x @ wk
    q = x @ wq
    v = x @ wv
    H = q.shape[-1]
    wei = (q @ jnp.swapaxes(k, -2, -1)) * (H ** -0.5)
    T = x.shape[1]
    tril = jnp.tril(jnp.ones((T, T), dtype=bool))
    wei = jnp.where(tril, wei, -jnp.inf)
    wei = jax.nn.softmax(wei, axis=-1)
    return wei @ v


if __name__ == "__main__":
    # Small shapes consistent with the module: B=2, T(sequence_len)=8, C(n_embd)=32, head_size=16
    B, T, C, HS = 2, 8, 32, 16
    dropout = 0.1  # unused at eval time

    key = jax.random.PRNGKey(0)
    kx, kk, kq, kv = jax.random.split(key, 4)

    x = jax.random.normal(kx, (B, T, C), dtype=jnp.float32)
    # Deterministic Linear-style init (uniform in [-1/sqrt(C), 1/sqrt(C)]),
    # stored transposed as (C, HS) so the kernel does x @ W.
    bound = 1.0 / (C ** 0.5)
    wk = jax.random.uniform(kk, (C, HS), minval=-bound, maxval=bound, dtype=jnp.float32)
    wq = jax.random.uniform(kq, (C, HS), minval=-bound, maxval=bound, dtype=jnp.float32)
    wv = jax.random.uniform(kv, (C, HS), minval=-bound, maxval=bound, dtype=jnp.float32)

    out = head_forward(x, wk, wq, wv)
    out = jax.block_until_ready(out)

    ref = head_reference(x, wk, wq, wv)
    assert out.shape == (B, T, HS), out.shape
    # Tolerance relaxed for bf16 MXU inputs + approx reciprocal (fp32 accumulation/softmax).
    max_err = float(jnp.max(jnp.abs(out - ref)))
    assert jnp.allclose(out, ref, atol=5e-2, rtol=5e-2), max_err

    print("KERNEL_OK")
</pallas_src>

<mosaic_0001>
module attributes {stable_mosaic.version = 11 : i64} {
  func.func @_head_kernel(%arg0: i32, %arg1: memref<2x8x32xbf16, #tpu.memory_space<vmem>>, %arg2: memref<32x48xbf16, #tpu.memory_space<vmem>>, %arg3: memref<2x128xf32, #tpu.memory_space<vmem>>) attributes {dimension_semantics = [#tpu.dimension_semantics<parallel>], iteration_bounds = array<i64: 1>, scalar_prefetch = 0 : i64, scratch_operands = 0 : i64, tpu.core_type = #tpu.core_type<tc>, window_params = [{transform_indices = @transform_0, window_bounds = array<i64: 2, 8, 32>}, {pipeline_mode = #tpu.pipeline_mode<synchronous>, transform_indices = @transform_1, window_bounds = array<i64: 32, 48>}, {transform_indices = @transform_2, window_bounds = array<i64: 2, 128>}]} {
    %c0 = arith.constant 0 : index
    %c0_0 = arith.constant 0 : index
    %c0_1 = arith.constant 0 : index
    %0 = vector.load %arg1[%c0, %c0_0, %c0_1] : memref<2x8x32xbf16, #tpu.memory_space<vmem>>, vector<2x8x32xbf16>
    %1 = vector.shape_cast %0 : vector<2x8x32xbf16> to vector<16x32xbf16>
    %c0_2 = arith.constant 0 : index
    %c0_3 = arith.constant 0 : index
    %2 = vector.load %arg2[%c0_2, %c0_3] : memref<32x48xbf16, #tpu.memory_space<vmem>>, vector<32x48xbf16>
    %cst = arith.constant dense<0.000000e+00> : vector<16x48xf32>
    %3 = tpu.matmul %1, %2, %cst {dimension_numbers = #tpu.dot_dimension_numbers<[1], [0], [0], [1], [0, 0, 1, 1], [], []>} : vector<16x32xbf16>, vector<32x48xbf16>, vector<16x48xf32> -> vector<16x48xf32>
    %4 = vector.shape_cast %3 : vector<16x48xf32> to vector<2x8x48xf32>
    %5 = vector.extract_strided_slice %4 {offsets = [0, 0, 0], sizes = [2, 8, 16], strides = [1, 1, 1]} : vector<2x8x48xf32> to vector<2x8x16xf32>
    %6 = arith.truncf %5 : vector<2x8x16xf32> to vector<2x8x16xbf16>
    %7 = vector.extract_strided_slice %4 {offsets = [0, 0, 16], sizes = [2, 8, 16], strides = [1, 1, 1]} : vector<2x8x48xf32> to vector<2x8x16xf32>
    %8 = arith.truncf %7 : vector<2x8x16xf32> to vector<2x8x16xbf16>
    %9 = vector.extract_strided_slice %4 {offsets = [0, 0, 32], sizes = [2, 8, 16], strides = [1, 1, 1]} : vector<2x8x48xf32> to vector<2x8x16xf32>
    %10 = arith.truncf %9 : vector<2x8x16xf32> to vector<2x8x16xbf16>
    %cst_4 = arith.constant dense<0.000000e+00> : vector<2x8x8xf32>
    %11 = tpu.matmul %6, %8, %cst_4 {dimension_numbers = #tpu.dot_dimension_numbers<[2], [2], [1], [1], [0, 0, 0, 1, 1, 1], [0], [0]>} : vector<2x8x16xbf16>, vector<2x8x16xbf16>, vector<2x8x8xf32> -> vector<2x8x8xf32>
    %12 = tpu.iota {dimensions = array<i32: 1>} : vector<8x8xi32>
    %13 = tpu.iota {dimensions = array<i32: 0>} : vector<8x8xi32>
    %14 = arith.cmpi sle, %12, %13 : vector<8x8xi32>
    %15 = vector.shape_cast %14 : vector<8x8xi1> to vector<1x8x8xi1>
    %cst_5 = arith.constant 0xFF800000 : f32
    %16 = vector.shape_cast %15 : vector<1x8x8xi1> to vector<1x8x8xi1>
    %17 = vector.broadcast %16 : vector<1x8x8xi1> to vector<2x8x8xi1>
    %18 = vector.broadcast %cst_5 : f32 to vector<2x8x8xf32>
    %19 = arith.select %17, %11, %18 : vector<2x8x8xi1>, vector<2x8x8xf32>
    %cst_6 = arith.constant dense<0xFF800000> : vector<2x8xf32>
    %20 = vector.multi_reduction <maximumf>, %19, %cst_6 [2] : vector<2x8x8xf32> to vector<2x8xf32>
    %21 = vector.shape_cast %20 : vector<2x8xf32> to vector<2x8x1xf32>
    %22 = vector.broadcast %21 : vector<2x8x1xf32> to vector<2x8x8xf32>
    %23 = arith.subf %19, %22 : vector<2x8x8xf32>
    %24 = math.exp %23 : vector<2x8x8xf32>
    %cst_7 = arith.constant dense<0.000000e+00> : vector<2x8xf32>
    %25 = vector.multi_reduction <add>, %24, %cst_7 [2] : vector<2x8x8xf32> to vector<2x8xf32>
    %26 = vector.shape_cast %25 : vector<2x8xf32> to vector<2x8x1xf32>
    %27 = tpu.reciprocal %26 {approx = true} : vector<2x8x1xf32> -> vector<2x8x1xf32>
    %28 = vector.broadcast %27 : vector<2x8x1xf32> to vector<2x8x8xf32>
    %29 = arith.mulf %24, %28 : vector<2x8x8xf32>
    %30 = arith.truncf %29 : vector<2x8x8xf32> to vector<2x8x8xbf16>
    %cst_8 = arith.constant dense<0.000000e+00> : vector<2x8x16xf32>
    %31 = tpu.matmul %30, %10, %cst_8 {dimension_numbers = #tpu.dot_dimension_numbers<[2], [1], [1], [2], [0, 0, 0, 1, 1, 2], [0], [0]>} : vector<2x8x8xbf16>, vector<2x8x16xbf16>, vector<2x8x16xf32> -> vector<2x8x16xf32>
    %32 = vector.extract_strided_slice %31 {offsets = [0, 0, 0], sizes = [2, 1, 16], strides = [1, 1, 1]} : vector<2x8x16xf32> to vector<2x1x16xf32>
    %33 = vector.shape_cast %32 : vector<2x1x16xf32> to vector<2x16xf32>
    %34 = vector.extract_strided_slice %31 {offsets = [0, 1, 0], sizes = [2, 1, 16], strides = [1, 1, 1]} : vector<2x8x16xf32> to vector<2x1x16xf32>
    %35 = vector.shape_cast %34 : vector<2x1x16xf32> to vector<2x16xf32>
    %36 = vector.extract_strided_slice %31 {offsets = [0, 2, 0], sizes = [2, 1, 16], strides = [1, 1, 1]} : vector<2x8x16xf32> to vector<2x1x16xf32>
    %37 = vector.shape_cast %36 : vector<2x1x16xf32> to vector<2x16xf32>
    %38 = vector.extract_strided_slice %31 {offsets = [0, 3, 0], sizes = [2, 1, 16], strides = [1, 1, 1]} : vector<2x8x16xf32> to vector<2x1x16xf32>
    %39 = vector.shape_cast %38 : vector<2x1x16xf32> to vector<2x16xf32>
    %40 = vector.extract_strided_slice %31 {offsets = [0, 4, 0], sizes = [2, 1, 16], strides = [1, 1, 1]} : vector<2x8x16xf32> to vector<2x1x16xf32>
    %41 = vector.shape_cast %40 : vector<2x1x16xf32> to vector<2x16xf32>
    %42 = vector.extract_strided_slice %31 {offsets = [0, 5, 0], sizes = [2, 1, 16], strides = [1, 1, 1]} : vector<2x8x16xf32> to vector<2x1x16xf32>
    %43 = vector.shape_cast %42 : vector<2x1x16xf32> to vector<2x16xf32>
    %44 = vector.extract_strided_slice %31 {offsets = [0, 6, 0], sizes = [2, 1, 16], strides = [1, 1, 1]} : vector<2x8x16xf32> to vector<2x1x16xf32>
    %45 = vector.shape_cast %44 : vector<2x1x16xf32> to vector<2x16xf32>
    %46 = vector.extract_strided_slice %31 {offsets = [0, 7, 0], sizes = [2, 1, 16], strides = [1, 1, 1]} : vector<2x8x16xf32> to vector<2x1x16xf32>
    %47 = vector.shape_cast %46 : vector<2x1x16xf32> to vector<2x16xf32>
    %48 = tpu.concatenate %33, %35, %37, %39, %41, %43, %45, %47 in 1 : vector<2x16xf32>, vector<2x16xf32>, vector<2x16xf32>, vector<2x16xf32>, vector<2x16xf32>, vector<2x16xf32>, vector<2x16xf32>, vector<2x16xf32> -> vector<2x128xf32>
    %c0_9 = arith.constant 0 : index
    %c0_10 = arith.constant 0 : index
    %49 = vector.load %arg3[%c0_9, %c0_10] : memref<2x128xf32, #tpu.memory_space<vmem>>, vector<2x128xf32>
    tpu.vector_store %arg3[%c0_9, %c0_10], %48 {strides = array<i32>} : memref<2x128xf32, #tpu.memory_space<vmem>>, vector<2x128xf32>,
    return
  }
  func.func @transform_0(%arg0: i32) -> (i32, i32, i32) {
    %c0_i32 = arith.constant 0 : i32
    %c0_i32_0 = arith.constant 0 : i32
    %c0_i32_1 = arith.constant 0 : i32
    return %arg0, %c0_i32, %c0_i32_0 : i32, i32, i32
  }
  func.func @transform_1(%arg0: i32) -> (i32, i32) {
    %c0_i32 = arith.constant 0 : i32
    %c0_i32_0 = arith.constant 0 : i32
    %c0_i32_1 = arith.constant 0 : i32
    return %c0_i32, %c0_i32_0 : i32, i32
  }
  func.func @transform_2(%arg0: i32) -> (i32, i32) {
    %c0_i32 = arith.constant 0 : i32
    %c0_i32_0 = arith.constant 0 : i32
    return %arg0, %c0_i32 : i32, i32
  }
}

</mosaic_0001>

<bundles_post_ra>
// kernel: tpu_custom_call.1
= control target key start
LH: loop header
LB: loop body
LE: loop exit
PB: predicated region body
PF: predicated region fallthrough
CT: control target
= control target key end

     0   :  { %7 = vsyncpa [#allocation3], 0  ;;  %s667_s0 = inlined_call_operand.hbm [shape: bf16[2,8,32], index: 0, kind: input, shape index: {}]   ;;  %s668_s1 = inlined_call_operand.hbm [shape: bf16[32,48], index: 1, kind: input, shape index: {}]   ;;  %s669_s2 = inlined_call_operand.hbm [shape: f32[2,128], index: 2, kind: output, shape index: {}]  }
   0x1   :  { %8 = vsyncpa [#allocation6], 0 }
   0x2   :  { %9 = vsyncpa [#allocation4], 0  ;;  %s564_s9 = smov [#allocation2]   ;;  %s492_s13 = scalar_lea.hbm %s667_s0, 128 }
   0x3   :  { %s15_s10 = sshll.u32 %s564_s9, 4  ;;  %p493_p0 = scmp.ne.s32.totalorder %s667_s0, %s492_s13  ;;  %s16_s10 = int_to_ptr.vmem [resolvable:$true] %s15_s10 }
   0x4   :  { %p496_p1 = scmp.lt.u32.totalorder %s492_s13, %s667_s0 }
   0x6   :  { %p498_p2 = pnand %p496_p1, %p493_p0 }
   0x8   :  { %501 = shalt.err (!%p498_p2)
}
   0x9   :  { %s502_s18 = scalar_lea.vmem %s16_s10, 128  ;;  %p507_p4 = scmp.lt.s32.totalorder %s16_s10, %s16_s10 }
   0xa   :  { %p503_p3 = scmp.ne.s32.totalorder %s16_s10, %s502_s18  ;;  %p508_p5 = scmp.lt.s32.totalorder %s502_s18, %s502_s18 }
   0xc   :  { %p509_p6 = por %p508_p5, %p507_p4 }
   0xe   :  { %p510_p7 = pnand %p509_p6, %p503_p3 }
  0x10   :  { %513 = shalt.err (!%p510_p7)
}
  0x11   :  { %s565_s19 = smov 64   ;;  %s566_s20 = smov 4  }
  0x12   :  { %21 = dma.hbm_to_vmem [thread:$0]  %s667_s0, 128, %s16_s10, [#allocation3], %s565_s19, %s565_s19, %s566_s20  }
  0x13   :  { %s567_s23 = smov [#allocation5]   ;;  %s514_s27 = scalar_lea.hbm %s668_s1, 256 }
  0x14   :  { %s27_s24 = sshll.u32 %s567_s23, 4  ;;  %p515_p8 = scmp.ne.s32.totalorder %s668_s1, %s514_s27  ;;  %s28_s24 = int_to_ptr.vmem [resolvable:$true] %s27_s24 }
  0x15   :  { %p518_p9 = scmp.lt.u32.totalorder %s514_s27, %s668_s1 }
  0x17   :  { %p520_p10 = pnand %p518_p9, %p515_p8 }
  0x19   :  { %523 = shalt.err (!%p520_p10)
}
  0x1a   :  { %s524_s4 = scalar_lea.vmem %s28_s24, 256  ;;  %p529_p12 = scmp.lt.s32.totalorder %s28_s24, %s28_s24 }
  0x1b   :  { %p525_p11 = scmp.ne.s32.totalorder %s28_s24, %s524_s4  ;;  %p530_p13 = scmp.lt.s32.totalorder %s524_s4, %s524_s4 }
  0x1d   :  { %p531_p0 = por %p530_p13, %p529_p12 }
  0x1f   :  { %p532_p1 = pnand %p531_p0, %p525_p11 }
  0x21   :  { %535 = shalt.err (!%p532_p1)
}
  0x22   :  { %33 = dma.hbm_to_vmem [thread:$0]  %s668_s1, 256, %s28_s24, [#allocation6], %s565_s19, %s565_s19, %s566_s20  }
  0x23   :  { %558 = dma.done.wait [#allocation3], 128  }
  0x24   :  { %559 = vsyncadd [#allocation3], 4294967168 }
  0x25   :  { %560 = dma.done.wait [#allocation6], 256  }
  0x26   :  { %561 = vsyncadd [#allocation6], 4294967040  ;;  %v568_v0 = vmov 0.0   ;;  %vm569_vm0 = vmmov 0   ;;  %v481_v1 = vld [vmem:[#allocation5] sm:$0xff]   ;;  %v482_v2 = vld [vmem:[#allocation5 + $0x8] sm:$0xff]   ;;  %v210_v14 = vlaneseq }
  0x27   :  { %436 = vmatprep.subr.bf16.mxu0 %v568_v0  ;;  %440 = vmatprep.mubr.msk.bf16.mxu0 %vm569_vm0, %v568_v0  ;;  %v483_v3 = vld [vmem:[#allocation2] sm:$0xff]   ;;  %vm64_vm1 = vcmask 261120   ;;  %s570_s1 = smov 112   ;;  %vm114_vm2 = vcmask 130048   ;;  %vm219_vm4 = vcmask 64512   ;;  %s571_s6 = smov 96  }
  0x28   :  { %444 = vmatprep.subr.bf16.mxu1 %v568_v0  ;;  %446 = vmatprep.mubr.msk.bf16.mxu1 %vm569_vm0, %v568_v0  ;;  %v211_v15 = vand.u32 127, %v210_v14  ;;  %v213_v16 = vshrl.u32 %v210_v14, 7  ;;  %vm249_vm5 = vcmask 1043456   ;;  %vm344_vm6 = vcmask 1041409   ;;  %s572_s7 = smov 16   ;;  %s573_s8 = smov 48  }
  0x29   :  { %437 = vmatpush3.bf16.msra.mxu0 %v481_v1  ;;  %s574_s9 = smov 32   ;;  %s575_s10 = smov 80   ;;  %vm390_vm7 = vcmask 392192   ;;  %vm392_vm8 = vcmask 523264   ;;  %vm394_vm9 = vcmask 654336   ;;  %vm396_vm10 = vcmask 785408  }
  0x2a   :  { %438 = vmatprep.subr.bf16.mxu0 %v568_v0  ;;  %vm214_vm3 = vcmp.le.s32.totalorder %v211_v15, %v213_v16  ;;  %s576_s11 = smov [#allocation7]   ;;  %vm398_vm11 = vcmask 916480  }
  0x2b   :  { %s407_s12 = sshll.u32 %s576_s11, 4  ;;  %s408_s12 = int_to_ptr.vmem [resolvable:$true] %s407_s12 }
  0x2c   :  { %s536_s13 = scalar_lea.vmem %s408_s12, 32  ;;  %p541_p3 = scmp.lt.s32.totalorder %s408_s12, %s408_s12 }
  0x2d   :  { %439 = vmatpush3.bf16.msra.mxu0 %v482_v2  ;;  %p537_p2 = scmp.ne.s32.totalorder %s408_s12, %s536_s13  ;;  %p542_p4 = scmp.lt.s32.totalorder %s536_s13, %s536_s13 }
  0x2e   :  { %450 = vmatprep.subr.bf16.mxu0 %v568_v0 }
  0x2f   :  { %p543_p5 = por %p542_p4, %p541_p3 }
  0x30   :  { %441 = vmatmul.mubr.msk.bf16.vlgmr.msra.gmra.mrb[0].mxu0 %vm64_vm1, %v483_v3 }
  0x31   :  { %452 = vmatprep.mubr.msk.bf16.mxu0 %vm569_vm0, %v568_v0  ;;  %p544_p6 = pnand %p543_p5, %p537_p2 }
 0x103   :  { %v102_v4 = vpop.f32.mrb[0].mxu0 }
 0x104   :  { %v109_v5 = vpack.c.bf16 %v102_v4, %v102_v4  ;;  %v442_v6 = vpop.f32.mrb[1].mxu0 }
 0x105   :  { %v105_v7 = vpop.f32.mrb[2].mxu0 }
 0x106   :  { %112 = vrot.lane.b32.xlu0 %v109_v5, %s570_s1  ;;  %v443_v8 = vpop.f32.mrb[3].mxu0  ;;  %v110_v9 = vpack.c.bf16 %v105_v7, %v105_v7 }
 0x10a   :  { %162 = vrot.lane.b32.xlu0 %v110_v9, %s570_s1 }
 0x178   :  { %v113_v10 = vpop.permute.xlu0 %112 }
 0x179   :  { %v119_v11 = vsel %vm114_vm2, %v113_v10, 0 }
 0x17a   :  { %445 = vmatpush3.bf16.xpose.msra.mxu1 %v119_v11 }
 0x17b   :  { %456 = vmatprep.subr.bf16.mxu1 %v568_v0 }
 0x17c   :  { %v163_v12 = vpop.permute.xlu0 %162 }
 0x17d   :  { %v168_v13 = vsel %vm114_vm2, %v163_v12, 0 }
 0x17e   :  { %451 = vmatpush3.bf16.xpose.msra.mxu0 %v168_v13 }
 0x17f   :  { %462 = vmatprep.subr.bf16.mxu0 %v568_v0 }
 0x181   :  { %447 = vmatmul.mubr.msk.bf16.vlgmr.msra.gmra.mrb[0].mxu1 %vm114_vm2, %v109_v5 }
 0x182   :  { %458 = vmatprep.mubr.msk.bf16.mxu1 %vm569_vm0, %v568_v0 }
 0x185   :  { %453 = vmatmul.mubr.msk.bf16.vlgmr.msra.gmra.mrb[4].mxu0 %vm114_vm2, %v110_v9 }
 0x186   :  { %464 = vmatprep.mubr.msk.bf16.mxu0 %vm569_vm0, %v568_v0 }
 0x254   :  { %v155_v17 = vpop.f32.mrb[0].mxu1 }
 0x255   :  { %v217_v18 = vsel %vm214_vm3, %v155_v17, -inf  ;;  %v448_v19 = vpop.f32.mrb[1].mxu1 }
 0x256   :  { %v158_v20 = vpop.f32.mrb[2].mxu1  ;;  %v220_v21 = vsel %vm219_vm4, %v217_v18, -inf }
 0x257   :  { %221 = vmax.xlane.f32.xlu1 %v220_v21  ;;  %v449_v22 = vpop.f32.mrb[3].mxu1 }
 0x258   :  { %v204_v23 = vpop.f32.mrb[4].mxu0 }
 0x259   :  { %v218_v24 = vsel %vm214_vm3, %v204_v23, -inf  ;;  %v454_v25 = vpop.f32.mrb[5].mxu0 }
 0x25a   :  { %v207_v26 = vpop.f32.mrb[6].mxu0  ;;  %v223_v27 = vsel %vm219_vm4, %v218_v24, -inf }
 0x25b   :  { %224 = vmax.xlane.f32.xlu1 %v223_v27  ;;  %v455_v28 = vpop.f32.mrb[7].mxu0 }
 0x26c   :  { %244 = vrot.lane.b32.xlu1 %v109_v5, %s571_s6 }
 0x2e4   :  { %v222_v29 = vpop.xlane.xlu1 %221 }
 0x2e5   :  { %v226_v30 = vsub.f32 %v217_v18, %v222_v29 }
 0x2e7   :  { %v228_v31 = vmul.f32 1.442695, %v226_v30 }
 0x2e8   :  { %v225_v32 = vpop.xlane.xlu1 %224 }
 0x2e9   :  { %484 = vpow2.f32 %v228_v31  ;;  %v227_v33 = vsub.f32 %v218_v24, %v225_v32 }
 0x2eb   :  { %v230_v34 = vmul.f32 1.442695, %v227_v33 }
 0x2ec   :  { %v245_v35 = vpop.permute.xlu1 %244 }
 0x2ed   :  { %486 = vpow2.f32 %v230_v34  ;;  %v251_v36 = vsel %vm249_vm5, %v245_v35, 0 }
 0x2ee   :  { %457 = vmatpush3.bf16.msra.mxu1 %v251_v36 }
 0x2f3   :  { %v485_v37 = vpop.eup %484 }
 0x2f4   :  { %v232_v38 = vsel %vm219_vm4, %v485_v37, 0.0 }
 0x2f5   :  { %233 = vadd.xlane.f32.xlu0 %v232_v38 }
 0x2f7   :  { %v487_v39 = vpop.eup %486 }
 0x2f8   :  { %v235_v40 = vsel %vm219_vm4, %v487_v39, 0.0 }
 0x2f9   :  { %236 = vadd.xlane.f32.xlu1 %v235_v40 }
 0x30a   :  { %293 = vrot.lane.b32.xlu1 %v110_v9, %s571_s6 }
 0x382   :  { %v234_v41 = vpop.xlane.xlu0 %233 }
 0x383   :  { %488 = vrcp.f32 %v234_v41 }
 0x386   :  { %v237_v42 = vpop.xlane.xlu1 %236 }
 0x387   :  { %490 = vrcp.f32 %v237_v42 }
 0x38a   :  { %v294_v43 = vpop.permute.xlu1 %293 }
 0x38b   :  { %v299_v44 = vsel %vm249_vm5, %v294_v43, 0 }
 0x38c   :  { %463 = vmatpush3.bf16.msra.mxu0 %v299_v44 }
 0x38d   :  { %v489_v45 = vpop.eup %488 }
 0x38e   :  { %v240_v46 = vmul.f32 %v489_v45, %v485_v37 }
 0x390   :  { %v242_v47 = vpack.c.bf16 %v240_v46, %v240_v46 }
 0x391   :  { %v491_v48 = vpop.eup %490 }
 0x392   :  { %v241_v49 = vmul.f32 %v491_v48, %v487_v39  ;;  %459 = vmatmul.mubr.msk.bf16.vlgmr.msra.gmra.mrb[4].mxu1 %vm219_vm4, %v242_v47 }
 0x394   :  { %v243_v50 = vpack.c.bf16 %v241_v49, %v241_v49 }
 0x396   :  { %465 = vmatmul.mubr.msk.bf16.vlgmr.msra.gmra.mrb[8].mxu0 %vm219_vm4, %v243_v50 }
 0x465   :  { %v287_v51 = vpop.f32.mrb[4].mxu1 }
 0x466   :  { %v460_v52 = vpop.f32.mrb[5].mxu1  ;;  %v347_v55 = vrot.slane %v287_v51, 1  ;;  %v358_v56 = vrot.slane %v287_v51, 3  ;;  %v352_v57 = vrot.slane %v287_v51, 2  ;;  %v364_v59 = vrot.slane %v287_v51, 4 }
 0x467   :  { %v290_v53 = vpop.f32.mrb[6].mxu1  ;;  %v370_v60 = vrot.slane %v287_v51, 5  ;;  %v376_v61 = vrot.slane %v287_v51, 6  ;;  %v382_v62 = vrot.slane %v287_v51, 7 }
 0x468   :  { %v461_v54 = vpop.f32.mrb[7].mxu1 }
 0x469   :  { %v335_v58 = vpop.f32.mrb[8].mxu0 }
 0x46a   :  { %v466_v63 = vpop.f32.mrb[9].mxu0  ;;  %v348_v0 = vsel %vm344_vm6, %v335_v58, %v347_v55  ;;  %v359_v1 = vrot.slane %v335_v58, 2  ;;  %v353_v2 = vrot.slane %v335_v58, 1  ;;  %v365_v3 = vrot.slane %v335_v58, 3 }
 0x46b   :  { %349 = vrot.lane.b32.xlu1 %v348_v0, %s572_s7  ;;  %v338_v4 = vpop.f32.mrb[10].mxu0  ;;  %v371_v5 = vrot.slane %v335_v58, 4  ;;  %v377_v6 = vrot.slane %v335_v58, 5  ;;  %v383_v7 = vrot.slane %v335_v58, 6  ;;  %v343_v8 = vrot.slane %v335_v58, 7 }
 0x46c   :  { %v467_v9 = vpop.f32.mrb[11].mxu0  ;;  %v360_v10 = vsel %vm344_vm6, %v359_v1, %v358_v56  ;;  %v354_v11 = vsel %vm344_vm6, %v353_v2, %v352_v57  ;;  %v366_v12 = vsel %vm344_vm6, %v365_v3, %v364_v59 }
 0x46d   :  { %361 = vrot.lane.b32.xlu0 %v360_v10, %s573_s8  ;;  %v372_v13 = vsel %vm344_vm6, %v371_v5, %v370_v60  ;;  %v378_v14 = vsel %vm344_vm6, %v377_v6, %v376_v61  ;;  %v384_v15 = vsel %vm344_vm6, %v383_v7, %v382_v62  ;;  %v345_v16 = vsel %vm344_vm6, %v343_v8, %v287_v51 }
 0x46f   :  { %355 = vrot.lane.b32.xlu1 %v354_v11, %s574_s9 }
 0x473   :  { %367 = vrot.lane.b32.xlu1 %v366_v12, %s565_s19 }
 0x477   :  { %373 = vrot.lane.b32.xlu1 %v372_v13, %s575_s10 }
 0x47b   :  { %379 = vrot.lane.b32.xlu1 %v378_v14, %s571_s6 }
 0x47f   :  { %385 = vrot.lane.b32.xlu1 %v384_v15, %s570_s1 }
 0x4dd   :  { %v350_v17 = vpop.permute.xlu1 %349 }
 0x4de   :  { %v388_v21 = vsel %vm114_vm2, %v345_v16, %v350_v17 }
 0x4df   :  { %v362_v23 = vpop.permute.xlu0 %361 }
 0x4e1   :  { %v356_v18 = vpop.permute.xlu1 %355 }
 0x4e2   :  { %v389_v22 = vsel %vm64_vm1, %v388_v21, %v356_v18 }
 0x4e3   :  { %v391_v25 = vsel %vm390_vm7, %v389_v22, %v362_v23 }
 0x4e5   :  { %v368_v19 = vpop.permute.xlu1 %367 }
 0x4e6   :  { %v393_v26 = vsel %vm392_vm8, %v391_v25, %v368_v19 }
 0x4e9   :  { %v374_v20 = vpop.permute.xlu1 %373 }
 0x4ea   :  { %v395_v27 = vsel %vm394_vm9, %v393_v26, %v374_v20 }
 0x4ed   :  { %v380_v24 = vpop.permute.xlu1 %379 }
 0x4ee   :  { %v397_v28 = vsel %vm396_vm10, %v395_v27, %v380_v24 }
 0x4f1   :  { %v386_v29 = vpop.permute.xlu1 %385 }
 0x4f2   :  { %v399_v30 = vsel %vm398_vm11, %v397_v28, %v386_v29 }
 0x4f3   :  { %400 = vst [vmem:[#allocation7] sm:$0x3] %v399_v30 }
 0x4f4   :  { %547 = shalt.err (!%p544_p6)
}
 0x4f5   :  { %s548_s16 = scalar_lea.hbm %s669_s2, 32 }
 0x4f6   :  { %p549_p7 = scmp.ne.s32.totalorder %s669_s2, %s548_s16  ;;  %p552_p8 = scmp.lt.u32.totalorder %s548_s16, %s669_s2 }
 0x4f8   :  { %p554_p9 = pnand %p552_p8, %p549_p7 }
 0x4fa   :  { %557 = shalt.err (!%p554_p9)
}
 0x4fb   :  { %410 = dma.vmem_to_hbm [thread:$0]  %s408_s12, 32, %s669_s2, [#allocation4]  }
 0x4fc   :  { %562 = dma.done.wait [#allocation4], 32  }
 0x4fd   :  { %563 = vsyncadd [#allocation4], 4294967264 }
 0x4fe   :  { %414 = vsyncpa [#allocation3], 1 }
 0x4ff   :  { %415 = vsyncpa [#allocation6], 1 }
 0x500   :  { %416 = vsyncpa [#allocation4], 1 }

</bundles_post_ra>
